<compile_context>
chip_gen: v7x
topology: tpu7x:2x2x1
jax: 0.10.0
libtpu: 0.0.40
codegen_flags: <defaults>
</compile_context>

<pallas_src>
import jax
import jax.numpy as jnp
from jax.experimental import pallas as pl
from jax.experimental.pallas import tpu as pltpu


def _make_flatten_dma_kernel(base_rows: int, rem_rows: int, nchunks: int):
    """Kernel: copy one contiguous row chunk HBM->HBM via async DMA.

    base_rows / rem_rows / nchunks are static Python ints baked into the
    kernel, so every DMA has a static size (remainder handled on the last
    grid step with its own static-size DMA).
    """

    def kernel(x_ref, o_ref, sem):
        i = pl.program_id(0)
        start = i * base_rows
        cp = pltpu.make_async_copy(
            x_ref.at[pl.ds(start, base_rows), :],
            o_ref.at[pl.ds(start, base_rows), :],
            sem,
        )
        cp.start()
        cp.wait()

        if rem_rows:
            # Rows not divisible by nchunks: last step also copies the tail.
            @pl.when(i == nchunks - 1)
            def _():
                tail = nchunks * base_rows  # static
                rcp = pltpu.make_async_copy(
                    x_ref.at[pl.ds(tail, rem_rows), :],
                    o_ref.at[pl.ds(tail, rem_rows), :],
                    sem,
                )
                rcp.start()
                rcp.wait()

    return kernel


def _pallas_flatten_copy(x2d: jax.Array) -> jax.Array:
    """Direct HBM->HBM copy of the (N, flat) slab using a few parallel DMAs."""
    rows, cols = x2d.shape
    itemsize = jnp.dtype(x2d.dtype).itemsize

    if rows == 0 or cols == 0:
        return x2d

    # Up to 4 DMAs (>=2 lets v7x shard across both TensorCores; neutral on
    # single-TC v5e/v6e).  Chunk along rows; each chunk is fully contiguous
    # in HBM, so each DMA is a single linear transfer.
    # TODO(synk): for batch==1 there is only one chunk, leaving one v7x TC
    # idle; splitting the flat axis instead would need a strided DMA.
    nchunks = max(1, min(4, rows))
    base_rows = rows // nchunks
    rem_rows = rows - base_rows * nchunks

    kernel = _make_flatten_dma_kernel(base_rows, rem_rows, nchunks)

    return pl.pallas_call(
        kernel,
        out_shape=jax.ShapeDtypeStruct((rows, cols), x2d.dtype),
        grid=(nchunks,),
        # Raw HBM refs on both sides: no VMEM staging, no auto-pipelining.
        in_specs=[pl.BlockSpec(memory_space=pl.ANY)],
        out_specs=pl.BlockSpec(memory_space=pl.ANY),
        scratch_shapes=[pltpu.SemaphoreType.DMA(())],
        # Zero flops, pure memory traffic: read + write of the whole slab.
        cost_estimate=pl.CostEstimate(
            flops=0,
            transcendentals=0,
            bytes_accessed=2 * rows * cols * itemsize,
        ),
        compiler_params=pltpu.CompilerParams(
            # Chunks write disjoint row ranges -> independent grid steps.
            dimension_semantics=("parallel",),
        ),
    )(x2d)


def flatten(x: jax.Array, use_kernel: bool = False) -> jax.Array:
    """Equivalent of torch's x.view(x.size(0), -1).

    Default path (`use_kernel=False`): pure reshape — metadata only, zero HBM
    traffic.  This is the recommended production path.

    `use_kernel=True`: routes the data through a Pallas direct HBM->HBM DMA
    copy (useful only as a fusion / prefetch anchor).
    """
    n = x.shape[0]
    flat = 1
    for d in x.shape[1:]:
        flat *= d

    # Metadata-only reshape == torch .view(N, -1); also the kernel's input
    # view (row-major order preserved, so semantics match exactly).
    x2d = x.reshape(n, flat)

    if not use_kernel:
        return x2d

    return _pallas_flatten_copy(x2d)


if __name__ == "__main__":
    key = jax.random.PRNGKey(0)
    # Small NCHW input: batch=2, channels=4, spatial=16x16.
    x = jax.random.normal(key, (2, 4, 16, 16), dtype=jnp.float32)

    ref = x.reshape(x.shape[0], -1)

    # Default (recommended) path: metadata-only reshape.
    y_fast = flatten(x)
    jax.block_until_ready(y_fast)
    assert y_fast.shape == (2, 4 * 16 * 16), y_fast.shape
    assert y_fast.dtype == x.dtype
    assert bool(jnp.all(y_fast == ref))

    # Kernel path (direct HBM->HBM DMA copy): run once and verify bit-exact.
    y_kernel = flatten(x, use_kernel=True)
    jax.block_until_ready(y_kernel)
    assert y_kernel.shape == (2, 4 * 16 * 16), y_kernel.shape
    assert y_kernel.dtype == x.dtype
    assert bool(jnp.all(y_kernel == ref))

    print("KERNEL_OK")
</pallas_src>

<mosaic_0001>
module attributes {stable_mosaic.version = 11 : i64} {
  func.func @kernel(%arg0: i32, %arg1: memref<2x1024xf32, #tpu.memory_space<any>>, %arg2: memref<2x1024xf32, #tpu.memory_space<any>>, %arg3: memref<!tpu.dma_semaphore, #tpu.memory_space<semaphore_mem>>) attributes {dimension_semantics = [#tpu.dimension_semantics<parallel>], iteration_bounds = array<i64: 2>, scalar_prefetch = 0 : i64, scratch_operands = 1 : i64, tpu.core_type = #tpu.core_type<tc>, window_params = [{}, {}]} {
    %c1_i32 = arith.constant 1 : i32
    %0 = arith.muli %arg0, %c1_i32 : i32
    %c0_i32 = arith.constant 0 : i32
    %1 = tpu.memref_slice %arg1[%0, %c0_i32] : memref<2x1024xf32, #tpu.memory_space<any>> -> memref<1x1024xf32, #tpu.memory_space<any>>
    %c0_i32_0 = arith.constant 0 : i32
    %2 = tpu.memref_slice %arg2[%0, %c0_i32_0] : memref<2x1024xf32, #tpu.memory_space<any>> -> memref<1x1024xf32, #tpu.memory_space<any>>
    tpu.enqueue_dma source(%1 : memref<1x1024xf32, #tpu.memory_space<any>>) target(%2 : memref<1x1024xf32, #tpu.memory_space<any>>) target_semaphore(%arg3 : memref<!tpu.dma_semaphore, #tpu.memory_space<semaphore_mem>>)
    %c0_i32_1 = arith.constant 0 : i32
    %3 = tpu.memref_slice %arg1[%0, %c0_i32_1] : memref<2x1024xf32, #tpu.memory_space<any>> -> memref<1x1024xf32, #tpu.memory_space<any>>
    %c0_i32_2 = arith.constant 0 : i32
    %4 = tpu.memref_slice %arg2[%0, %c0_i32_2] : memref<2x1024xf32, #tpu.memory_space<any>> -> memref<1x1024xf32, #tpu.memory_space<any>>
    tpu.wait_dma2 semaphore(%arg3 : memref<!tpu.dma_semaphore, #tpu.memory_space<semaphore_mem>>) src(%3 : memref<1x1024xf32, #tpu.memory_space<any>>) dst(%4 : memref<1x1024xf32, #tpu.memory_space<any>>)
    return
  }
}

</mosaic_0001>

<bundles_post_ra>
// kernel: tpu_custom_call.1
= control target key start
LH: loop header
LB: loop body
LE: loop exit
PB: predicated region body
PF: predicated region fallthrough
CT: control target
= control target key end

     0   :  { %s85_s6 = smov 0   ;;  %s110_s0 = inlined_call_operand.hbm [shape: f32[2,1024], index: 0, kind: input, shape index: {}]   ;;  %s111_s1 = inlined_call_operand.hbm [shape: f32[2,1024], index: 1, kind: output, shape index: {}]  }
   0x1 LB: > { %s13_s7 = sshrl.u32 %s87_s6, 1  ;;  %s14_s8 = sand.u32 1, %s87_s6   ;;  %s87_s6 = sphi %s85_s6, %s11_s6  }
   0x2   : > { %s62_s9 = sshll.u32 %s13_s7, 4  ;;  %s89_s11 = smov 32  }
   0x3   : > { %s16_s10 = sadd.s32 %s62_s9, %s14_s8  ;;  %33 = sst [smem:[#allocation4]] %s89_s11 }
   0x4   : > { %s63_s12 = sshll.u32 %s16_s10, 4  ;;  %35 = sst [smem:[#allocation4 + $0x1]] %s89_s11 }
   0x5   : > { %s18_s15 = scalar_lea.hbm %s110_s0, %s63_s12  ;;  %s20_s18 = scalar_lea.hbm %s111_s1, %s63_s12 }
   0x6   : > { %s90_s19 = smov 1   ;;  %s91_s20 = smov [#allocation2]  }
   0x7   : > { %37 = sst [smem:[#allocation4 + $0x2]] %s90_s19  ;;  %s92_s21 = smov [#allocation3]  }
   0x8   : > { %s93_s22 = smov 0  }
   0x9   : > { %39 = dma.general %s18_s15, 128, %s20_s18, %s91_s20, %s92_s21, [#allocation4], %s93_s22, 0  }
   0xa   : > { %83 = dma.done.wait [#allocation2], 128 }
   0xb   : > { %84 = vsyncadd [#allocation2], 4294967168  ;;  %s11_s6 = sadd.s32 1, %s87_s6  }
   0xc   : > { %p8_p0 = scmp.ge.s32.totalorder %s11_s6, 2  }
   0xe   :  { %10 = sbr.rel (!%p8_p0) target bundleno = 1 (0x1), region = 23 }
  0x15   :  { %43 = vsyncmov [#allocation2] }
  0x18   :  { %s44_s23 = vpop.sfrf %43 }
  0x19   :  { %p65_p1 = scmp.ne.s32.totalorder %s44_s23, 0 }
  0x1b   :  { %48 = shalt.err (%p65_p1)  }

</bundles_post_ra>
